<compile_context>
chip_gen: v5e
topology: v5e:2x2
jax: 0.10.0
libtpu: 0.0.40
codegen_flags: <defaults>
</compile_context>

<pallas_src>
import functools

import jax
import jax.numpy as jnp
from jax.experimental import pallas as pl
from jax.experimental.pallas import tpu as pltpu


_VMEM_BUDGET = 12 * 2**20  # conservative: fits v5e's 16 MiB default scoped VMEM


# ----------------------------- Pallas kernels ---------------------------------


def _lin_adapt_kernel_channels_on_lanes(x_ref, w_ref, b_ref, o_ref, *,
                                        compute_dtype, batch_tile):
    """Batch-blocked fused GEMM; channels sit on the 128-lane axis.

    x_ref : (Bt, L, Ct)  native layout (time x channels per batch)
    w_ref : (P, L)       fused head weight  Wt@A^T + Ws@(I - A^T)  (VMEM-resident)
    b_ref : (P, 1)       fused bias (b_trend + b_season), f32       (VMEM-resident)
    o_ref : (Bt, P, Ct)
    """
    w = w_ref[...].astype(compute_dtype)
    b = b_ref[...].astype(jnp.float32)
    # Unrolled over the small static batch tile: one (P,L)@(L,Ct) MXU GEMM each.
    for i in range(batch_tile):
        x = x_ref[i].astype(compute_dtype)                          # (L, Ct)
        acc = jnp.dot(w, x, preferred_element_type=jnp.float32)     # (P, Ct) f32 acc
        o_ref[i] = (acc + b).astype(o_ref.dtype)


def _lin_adapt_kernel_rows(x_ref, w_ref, b_ref, o_ref, *, compute_dtype):
    """Lane-dense small-C path: rows = (batch*channel), pred_len on lanes.

    x_ref : (Mt, L), w_ref : (L, P), b_ref : (1, P), o_ref : (Mt, P)
    """
    x = x_ref[...].astype(compute_dtype)
    w = w_ref[...].astype(compute_dtype)
    acc = jnp.dot(x, w, preferred_element_type=jnp.float32)         # (Mt, P) f32 acc
    o_ref[...] = (acc + b_ref[...].astype(jnp.float32)).astype(o_ref.dtype)


# --------------------------- trace-time weight prep ----------------------------


def _moving_average_matrix(seq_len, kernel_size, dtype=jnp.float32):
    """A[s, t] such that trend[:, t] = sum_s x[:, s] * A[s, t] (replicate padding)."""
    assert kernel_size % 2 == 1, "MovingAverage folding assumes an odd kernel_size"
    assert seq_len >= 2, "moving-average operator construction assumes seq_len >= 2"
    pad = (kernel_size - 1) // 2
    s = jnp.arange(seq_len)[:, None]          # source (input) time
    t = jnp.arange(seq_len)[None, :]          # target (output) time
    cnt_left = jnp.maximum(pad - t + 1, 0)                          # mass clamped to s == 0
    cnt_right = jnp.maximum(t + pad - (seq_len - 1) + 1, 0)         # mass clamped to s == L-1
    cnt_mid = ((s >= t - pad) & (s <= t + pad)).astype(jnp.int32)
    cnt = jnp.where(s == 0, cnt_left,
                    jnp.where(s == seq_len - 1, cnt_right, cnt_mid))
    return cnt.astype(dtype) * (1.0 / kernel_size)


# ------------------------------ forward paths ----------------------------------


def _forward_channels_on_lanes(x, w_fused, bias, compute_dtype,
                               max_channel_tile, max_batch_tile):
    """C >= 128: channels on lanes, batch-blocked grid, no wrapper pad/slice."""
    B, L, C = x.shape
    P = w_fused.shape[1]
    assert max_channel_tile % 128 == 0

    w_t = w_fused.T.astype(compute_dtype)      # (P, L)
    b2 = bias.reshape(P, 1)

    itemsize = jnp.dtype(x.dtype).itemsize
    w_bytes = P * L * jnp.dtype(compute_dtype).itemsize + P * 4

    # Channel tile: multiple of 128 (lane-dense); ragged last block is read-padded /
    # write-masked by Pallas, so no jnp.pad or output slice is needed.
    ct = min(max_channel_tile, 128 * (C // 128))

    # Batch tile: target >= ~1 MiB of x per grid step, capped by the VMEM budget
    # (double-buffered in + out tiles plus the resident fused weight/bias).
    slab = L * ct * itemsize
    bt = max(1, min(B, max_batch_tile, pl.cdiv(1 << 20, slab)))
    while bt > 1 and 2 * bt * (L + P) * ct * itemsize + w_bytes > _VMEM_BUDGET:
        bt -= 1

    grid = (pl.cdiv(B, bt), pl.cdiv(C, ct))
    cost = pl.CostEstimate(
        flops=2 * B * P * L * C, transcendentals=0,
        bytes_accessed=B * (L + P) * C * itemsize + w_bytes)

    return pl.pallas_call(
        functools.partial(_lin_adapt_kernel_channels_on_lanes,
                          compute_dtype=compute_dtype, batch_tile=bt),
        out_shape=jax.ShapeDtypeStruct((B, P, C), x.dtype),
        grid=grid,
        in_specs=[
            pl.BlockSpec((bt, L, ct), lambda b, c: (b, 0, c)),   # x tile
            pl.BlockSpec((P, L), lambda b, c: (0, 0)),           # VMEM-resident weight
            pl.BlockSpec((P, 1), lambda b, c: (0, 0)),           # VMEM-resident bias
        ],
        out_specs=pl.BlockSpec((bt, P, ct), lambda b, c: (b, 0, c)),
        compiler_params=pltpu.CompilerParams(
            dimension_semantics=("parallel", "parallel")),
        cost_estimate=cost,
    )(x, w_t, b2)


def _forward_lane_dense_rows(x, w_fused, bias, compute_dtype):
    """C < 128: one layout transpose, then a lane-dense (B*C, L) @ (L, P) row GEMM."""
    B, L, C = x.shape
    P = w_fused.shape[1]
    M = B * C

    # Layout plumbing: rows (batch*channel) on sublanes, pred_len on lanes — far
    # cheaper than wasting (128 - C)/128 of every vreg, DMA row, and store.
    x2 = jnp.transpose(x, (0, 2, 1)).reshape(M, L)
    w = w_fused.astype(compute_dtype)          # (L, P)
    b2 = bias.reshape(1, P)

    itemsize = jnp.dtype(x.dtype).itemsize
    w_bytes = L * P * jnp.dtype(compute_dtype).itemsize + P * 4
    mt = M
    if M > 1024:
        mt = 1024                               # multiple of 8; ragged last block masked
        while mt > 8 and 2 * mt * (L + P) * itemsize + w_bytes > _VMEM_BUDGET:
            mt //= 2

    grid = (pl.cdiv(M, mt),)
    cost = pl.CostEstimate(
        flops=2 * M * P * L, transcendentals=0,
        bytes_accessed=M * (L + P) * itemsize + w_bytes)

    out2 = pl.pallas_call(
        functools.partial(_lin_adapt_kernel_rows, compute_dtype=compute_dtype),
        out_shape=jax.ShapeDtypeStruct((M, P), x.dtype),
        grid=grid,
        in_specs=[
            pl.BlockSpec((mt, L), lambda i: (i, 0)),
            pl.BlockSpec((L, P), lambda i: (0, 0)),
            pl.BlockSpec((1, P), lambda i: (0, 0)),
        ],
        out_specs=pl.BlockSpec((mt, P), lambda i: (i, 0)),
        compiler_params=pltpu.CompilerParams(dimension_semantics=("parallel",)),
        cost_estimate=cost,
    )(x2, w, b2)

    return jnp.transpose(out2.reshape(B, C, P), (0, 2, 1))


def lin_adapt_forward(x, w_trend, b_trend, w_season, b_season, kernel_size, *,
                      compute_dtype=jnp.bfloat16, max_channel_tile=512,
                      max_batch_tile=8):
    """x: (B, seq_len, C).  Returns (B, pred_len, C) in x.dtype (individual=False).

    Pass x in bf16 (and keep params f32) to halve HBM traffic end-to-end; the output
    dtype always follows x.dtype (no wrapper-side casts are inserted).
    """
    B, L, C = x.shape
    P = w_trend.shape[0]                      # nn.Linear weight is (pred_len, seq_len)

    # Fold decomposition + both heads into one small weight at trace time:
    #   out_time = x_time @ (A @ Wt^T + (I - A) @ Ws^T) + (b_trend + b_season)
    A = _moving_average_matrix(L, kernel_size)                                   # (L, L)
    w_fused = (A @ w_trend.T.astype(A.dtype)
               + (jnp.eye(L, dtype=A.dtype) - A) @ w_season.T.astype(A.dtype))   # (L, P)
    bias = (b_trend + b_season).astype(jnp.float32)                              # (P,)

    if C >= 128:
        return _forward_channels_on_lanes(x, w_fused, bias, compute_dtype,
                                          max_channel_tile, max_batch_tile)
    return _forward_lane_dense_rows(x, w_fused, bias, compute_dtype)


# --------------------------- pure-JAX reference --------------------------------


def lin_adapt_reference(x, w_trend, b_trend, w_season, b_season, kernel_size):
    pad = (kernel_size - 1) // 2
    front = jnp.repeat(x[:, :1, :], pad, axis=1)
    end = jnp.repeat(x[:, -1:, :], pad, axis=1)
    xp = jnp.concatenate([front, x, end], axis=1)          # (B, L+2*pad, C)
    L = x.shape[1]
    windows = jnp.stack([xp[:, j:j + L, :] for j in range(kernel_size)], axis=0)
    trend = jnp.mean(windows, axis=0)                      # (B, L, C)
    season = x - trend
    trend_t = jnp.transpose(trend, (0, 2, 1))              # (B, C, L)
    season_t = jnp.transpose(season, (0, 2, 1))
    out = (trend_t @ w_trend.T + b_trend) + (season_t @ w_season.T + b_season)
    return jnp.transpose(out, (0, 2, 1))                   # (B, P, C)


# ------------------------------- main ------------------------------------------


def _make_params(k, seq_len, pred_len):
    k_wt, k_bt, k_ws, k_bs = jax.random.split(k, 4)
    scale = 1.0 / jnp.sqrt(jnp.float32(seq_len))
    w_trend = jax.random.normal(k_wt, (pred_len, seq_len), jnp.float32) * scale
    b_trend = jax.random.normal(k_bt, (pred_len,), jnp.float32) * scale
    w_season = jax.random.normal(k_ws, (pred_len, seq_len), jnp.float32) * scale
    b_season = jax.random.normal(k_bs, (pred_len,), jnp.float32) * scale
    return w_trend, b_trend, w_season, b_season


if __name__ == "__main__":
    key = jax.random.PRNGKey(0)
    k1, k2, k3, k4 = jax.random.split(key, 4)

    # --- Test 1: small-C (lane-dense rows) path, typical tiny config ------------
    B, L, C, P, ks = 2, 16, 4, 8, 5
    x = jax.random.normal(k1, (B, L, C), jnp.float32)
    params = _make_params(k2, L, P)
    ref = lin_adapt_reference(x, *params, ks)

    out_f32 = jax.block_until_ready(
        lin_adapt_forward(x, *params, ks, compute_dtype=jnp.float32))
    assert out_f32.shape == (B, P, C), out_f32.shape
    assert jnp.allclose(out_f32, ref, atol=1e-4, rtol=1e-4), (
        float(jnp.max(jnp.abs(out_f32 - ref))))

    out_bf16 = jax.block_until_ready(lin_adapt_forward(x, *params, ks))
    assert out_bf16.shape == (B, P, C), out_bf16.shape
    assert jnp.allclose(out_bf16, ref, atol=5e-2, rtol=5e-2), (
        float(jnp.max(jnp.abs(out_bf16 - ref))))

    # --- Test 2: channels-on-lanes path, ragged channel AND batch blocks --------
    B, L, C, P, ks = 3, 24, 200, 8, 7
    x = jax.random.normal(k3, (B, L, C), jnp.float32)
    params = _make_params(k4, L, P)
    ref = lin_adapt_reference(x, *params, ks)

    out_f32 = jax.block_until_ready(
        lin_adapt_forward(x, *params, ks, compute_dtype=jnp.float32,
                          max_batch_tile=2))
    assert out_f32.shape == (B, P, C), out_f32.shape
    assert jnp.allclose(out_f32, ref, atol=1e-4, rtol=1e-4), (
        float(jnp.max(jnp.abs(out_f32 - ref))))

    out_bf16 = jax.block_until_ready(
        lin_adapt_forward(x, *params, ks, max_batch_tile=2))
    assert out_bf16.shape == (B, P, C), out_bf16.shape
    assert jnp.allclose(out_bf16, ref, atol=5e-2, rtol=5e-2), (
        float(jnp.max(jnp.abs(out_bf16 - ref))))

    print("KERNEL_OK")
</pallas_src>

<mosaic_0001>
module attributes {stable_mosaic.version = 11 : i64} {
  func.func @_lin_adapt_kernel_rows(%arg0: i32, %arg1: memref<8x16xf32, #tpu.memory_space<vmem>>, %arg2: memref<16x8xf32, #tpu.memory_space<vmem>>, %arg3: memref<1x8xf32, #tpu.memory_space<vmem>>, %arg4: memref<8x8xf32, #tpu.memory_space<vmem>>) attributes {dimension_semantics = [#tpu.dimension_semantics<parallel>], iteration_bounds = array<i64: 1>, scalar_prefetch = 0 : i64, scratch_operands = 0 : i64, tpu.core_type = #tpu.core_type<tc>, window_params = [{transform_indices = @transform_0, window_bounds = array<i64: 8, 16>}, {pipeline_mode = #tpu.pipeline_mode<synchronous>, transform_indices = @transform_1, window_bounds = array<i64: 16, 8>}, {pipeline_mode = #tpu.pipeline_mode<synchronous>, transform_indices = @transform_2, window_bounds = array<i64: 1, 8>}, {transform_indices = @transform_3, window_bounds = array<i64: 8, 8>}]} {
    %c0 = arith.constant 0 : index
    %c0_0 = arith.constant 0 : index
    %0 = vector.load %arg1[%c0, %c0_0] : memref<8x16xf32, #tpu.memory_space<vmem>>, vector<8x16xf32>
    %c0_1 = arith.constant 0 : index
    %c0_2 = arith.constant 0 : index
    %1 = vector.load %arg2[%c0_1, %c0_2] : memref<16x8xf32, #tpu.memory_space<vmem>>, vector<16x8xf32>
    %cst = arith.constant dense<0.000000e+00> : vector<8x8xf32>
    %2 = tpu.matmul %0, %1, %cst {dimension_numbers = #tpu.dot_dimension_numbers<[1], [0], [0], [1], [0, 0, 1, 1], [], []>} : vector<8x16xf32>, vector<16x8xf32>, vector<8x8xf32> -> vector<8x8xf32>
    %c0_3 = arith.constant 0 : index
    %c0_4 = arith.constant 0 : index
    %3 = vector.load %arg3[%c0_3, %c0_4] : memref<1x8xf32, #tpu.memory_space<vmem>>, vector<1x8xf32>
    %4 = vector.broadcast %3 : vector<1x8xf32> to vector<8x8xf32>
    %5 = arith.addf %2, %4 : vector<8x8xf32>
    %c0_5 = arith.constant 0 : index
    %c0_6 = arith.constant 0 : index
    %6 = vector.load %arg4[%c0_5, %c0_6] : memref<8x8xf32, #tpu.memory_space<vmem>>, vector<8x8xf32>
    tpu.vector_store %arg4[%c0_5, %c0_6], %5 {strides = array<i32>} : memref<8x8xf32, #tpu.memory_space<vmem>>, vector<8x8xf32>,
    return
  }
  func.func @transform_0(%arg0: i32) -> (i32, i32) {
    %c0_i32 = arith.constant 0 : i32
    %c0_i32_0 = arith.constant 0 : i32
    return %arg0, %c0_i32 : i32, i32
  }
  func.func @transform_1(%arg0: i32) -> (i32, i32) {
    %c0_i32 = arith.constant 0 : i32
    %c0_i32_0 = arith.constant 0 : i32
    %c0_i32_1 = arith.constant 0 : i32
    return %c0_i32, %c0_i32_0 : i32, i32
  }
  func.func @transform_2(%arg0: i32) -> (i32, i32) {
    %c0_i32 = arith.constant 0 : i32
    %c0_i32_0 = arith.constant 0 : i32
    %c0_i32_1 = arith.constant 0 : i32
    return %c0_i32, %c0_i32_0 : i32, i32
  }
  func.func @transform_3(%arg0: i32) -> (i32, i32) {
    %c0_i32 = arith.constant 0 : i32
    %c0_i32_0 = arith.constant 0 : i32
    return %arg0, %c0_i32 : i32, i32
  }
}

</mosaic_0001>

<bundles_post_ra>
// kernel: tpu_custom_call.1
= control target key start
LH: loop header
LB: loop body
LE: loop exit
PB: predicated region body
PF: predicated region fallthrough
CT: control target
= control target key end

     0   :  { %vm22_vm0 = vcmask 130048   ;;  %s129_s0 = inlined_call_operand.vmem [shape: f32[8,16], index: 0, kind: input, shape index: {}]   ;;  %s130_s1 = inlined_call_operand.vmem [shape: f32[16,8], index: 1, kind: input, shape index: {}]   ;;  %s131_s2 = inlined_call_operand.vmem [shape: f32[1,8], index: 2, kind: input, shape index: {}]   ;;  %s132_s3 = inlined_call_operand.hbm [shape: f32[8,8], index: 3, kind: output, shape index: {}]  }
   0x1   :  { %v17_v0 = vld [vmem:[%s130_s1 + $0x8] sm:$0xff]  ;;  %v16_v1 = vld [vmem:[%s130_s1] sm:$0xff] }
   0x2   :  { %40 = vmatpush.msra.mxu0 %v17_v0  ;;  %v15_v2 = vld [vmem:[%s129_s0] sm:$0xff] }
   0x3   :  { %8 = vsyncpa [#allocation3], 0  ;;  %v66_v3 = vld [vmem:[%s131_s2] ss:$0 sm:$0xff]  ;;  %s93_s20 = smov [#allocation2]   ;;  %s55_s24 = sshll.u32 %s132_s3, 4  ;;  %s56_s24 = int_to_ptr.hbm [resolvable:$true] %s55_s24 }
   0x4   :  { %41 = vmatpush.msra.mxu0 %v16_v1  ;;  %s53_s21 = sshll.u32 %s93_s20, 4  ;;  %vm46_vm1 = vcmask 64512   ;;  %s54_s21 = int_to_ptr.vmem [resolvable:$true] %s53_s21 }
   0x5   :  { %64 = vmatmul.msk.f32.vlgmr.msra.gmra.mxu0 %vm22_vm0, %v15_v2 }
  0x82   :  { %v43_v4 = vpop.f32.mrf.mxu0 }
  0x83   :  { %v44_v5 = vadd.f32 %v66_v3, %v43_v4 }
  0x85   :  { %47 = vst.msk [vmem:[#allocation2] sm:$0xff] %vm46_vm1, %v44_v5 }
  0x86   :  { %58 = dma.vmem_to_hbm [thread:$0]  %s54_s21, 128, %s56_s24, [#allocation3]  }
  0x87   :  { %91 = dma.done.wait [#allocation3], 128  }
  0x88   :  { %92 = vsyncadd [#allocation3], 4294967168 }
  0x89   :  { %63 = vsyncpa [#allocation3], 1 }

</bundles_post_ra>
